<compile_context>
chip_gen: v7x
topology: tpu7x:2x2x1
jax: 0.10.0
libtpu: 0.0.40
codegen_flags: <defaults>
</compile_context>

<pallas_src>
import functools

import jax
import jax.numpy as jnp
from jax.experimental import pallas as pl
from jax.experimental.pallas import tpu as pltpu


def _vector_dropout_kernel(x_ref, f_ref, o_ref):
    # x_ref: (block_rows, vec_dim), f_ref: (block_rows, 1) pre-scaled keep
    # factor (0 or 1/keep_prob).  Broadcast multiply over the lane dim.
    o_ref[...] = x_ref[...] * f_ref[...]


def _round_up(a, b):
    return ((a + b - 1) // b) * b


def _choose_block_rows(rows, vec_dim, dtype_bytes,
                       target_rows=512, vmem_budget=24 * 1024 * 1024):
    """Largest row tile (multiple of 8) whose double-buffered in+out working
    set stays within a budget safe for v5e/v6e/v7x scoped VMEM."""
    block_rows = min(target_rows, _round_up(rows, 8))

    def working_set(br):
        # (x in + out) double-buffered + (rows,1) factor double-buffered.
        return br * vec_dim * dtype_bytes * 2 * 2 + br * dtype_bytes * 2 * 2

    while block_rows > 8 and working_set(block_rows) > vmem_budget:
        block_rows //= 2
    return max(8, _round_up(block_rows, 8))


def vector_dropout(x, drop_rate, key, *, training=True, tile_rows=512):
    """Pallas implementation of VectorDropout.forward.

    Args:
      x: array of shape (*, vec_dim).
      drop_rate: python float in [0, 1).
      key: jax.random PRNG key for the per-vector Bernoulli mask.
      training: if False, identity (matches nn.Module eval mode).
      tile_rows: target row-tile size (auto-clamped to fit VMEM).
    """
    if not training or drop_rate == 0.0:
        return x

    keep_prob = 1.0 - float(drop_rate)
    orig_shape = x.shape
    vec_dim = orig_shape[-1]
    rows = 1
    for d in orig_shape[:-1]:
        rows *= d

    dtype = x.dtype
    dtype_bytes = jnp.dtype(dtype).itemsize
    block_rows = _choose_block_rows(rows, vec_dim, dtype_bytes, target_rows=tile_rows)
    padded_rows = _round_up(rows, block_rows)
    grid = (padded_rows // block_rows,)

    x2 = x.reshape(rows, vec_dim)

    # One Bernoulli draw per vector; fold the 1/keep_prob rescale in once so
    # the kernel is a single broadcast multiply in the native dtype.
    keep = jax.random.bernoulli(key, p=keep_prob, shape=(rows, 1))
    factor = keep.astype(dtype) * jnp.asarray(1.0 / keep_prob, dtype=dtype)

    if padded_rows != rows:
        pad = padded_rows - rows
        x2 = jnp.pad(x2, ((0, pad), (0, 0)))
        factor = jnp.pad(factor, ((0, pad), (0, 0)))

    # TODO(synk): for vec_dim < 128 (or non-multiples of 128), pack several
    # vectors per 128-lane row in the wrapper for lane-dense stores.
    out = pl.pallas_call(
        _vector_dropout_kernel,
        out_shape=jax.ShapeDtypeStruct((padded_rows, vec_dim), dtype),
        grid=grid,
        in_specs=[
            pl.BlockSpec((block_rows, vec_dim), lambda i: (i, 0)),
            pl.BlockSpec((block_rows, 1), lambda i: (i, 0)),
        ],
        out_specs=pl.BlockSpec((block_rows, vec_dim), lambda i: (i, 0)),
        compiler_params=pltpu.CompilerParams(
            dimension_semantics=("parallel",),      # independent row tiles
            vmem_limit_bytes=32 * 1024 * 1024,      # raise v5e's 16 MiB default
        ),
    )(x2, factor)

    if padded_rows != rows:
        out = out[:rows]
    return out.reshape(orig_shape)


if __name__ == "__main__":
    root = jax.random.PRNGKey(0)
    data_key, mask_key = jax.random.split(root)

    # x: (*, vec_dim) -> (2, 16, 128): 32 vectors of dim 128.
    x = jax.random.normal(data_key, (2, 16, 128), dtype=jnp.float32)
    drop_rate = 0.25
    keep_prob = 1.0 - drop_rate

    y = vector_dropout(x, drop_rate, mask_key, training=True)
    y = jax.block_until_ready(y)

    # Each row must be either all-zero or exactly x / keep_prob.
    y2 = y.reshape(-1, 128)
    x2 = x.reshape(-1, 128)
    row_is_zero = jnp.all(y2 == 0.0, axis=-1)
    row_is_scaled = jnp.all(jnp.abs(y2 - x2 / keep_prob) < 1e-5, axis=-1)
    assert bool(jnp.all(row_is_zero | row_is_scaled)), "rows must be dropped or rescaled"

    # Eval mode is identity.
    y_eval = vector_dropout(x, drop_rate, mask_key, training=False)
    y_eval = jax.block_until_ready(y_eval)
    assert bool(jnp.all(y_eval == x))

    print("KERNEL_OK")
</pallas_src>

<mosaic_0001>
module attributes {stable_mosaic.version = 11 : i64} {
  func.func @_vector_dropout_kernel(%arg0: i32, %arg1: memref<32x128xf32, #tpu.memory_space<vmem>>, %arg2: memref<32x1xf32, #tpu.memory_space<vmem>>, %arg3: memref<32x128xf32, #tpu.memory_space<vmem>>) attributes {dimension_semantics = [#tpu.dimension_semantics<parallel>], iteration_bounds = array<i64: 1>, scalar_prefetch = 0 : i64, scratch_operands = 0 : i64, tpu.core_type = #tpu.core_type<tc>, window_params = [{transform_indices = @transform_0, window_bounds = array<i64: 32, 128>}, {transform_indices = @transform_1, window_bounds = array<i64: 32, 1>}, {transform_indices = @transform_2, window_bounds = array<i64: 32, 128>}]} {
    %c0 = arith.constant 0 : index
    %c0_0 = arith.constant 0 : index
    %0 = vector.load %arg1[%c0, %c0_0] : memref<32x128xf32, #tpu.memory_space<vmem>>, vector<32x128xf32>
    %c0_1 = arith.constant 0 : index
    %c0_2 = arith.constant 0 : index
    %1 = vector.load %arg2[%c0_1, %c0_2] : memref<32x1xf32, #tpu.memory_space<vmem>>, vector<32x1xf32>
    %2 = vector.broadcast %1 : vector<32x1xf32> to vector<32x128xf32>
    %3 = arith.mulf %0, %2 : vector<32x128xf32>
    %c0_3 = arith.constant 0 : index
    %c0_4 = arith.constant 0 : index
    %4 = vector.load %arg3[%c0_3, %c0_4] : memref<32x128xf32, #tpu.memory_space<vmem>>, vector<32x128xf32>
    tpu.vector_store %arg3[%c0_3, %c0_4], %3 {strides = array<i32>} : memref<32x128xf32, #tpu.memory_space<vmem>>, vector<32x128xf32>,
    return
  }
  func.func @transform_0(%arg0: i32) -> (i32, i32) {
    %c0_i32 = arith.constant 0 : i32
    %c0_i32_0 = arith.constant 0 : i32
    return %arg0, %c0_i32 : i32, i32
  }
  func.func @transform_1(%arg0: i32) -> (i32, i32) {
    %c0_i32 = arith.constant 0 : i32
    %c0_i32_0 = arith.constant 0 : i32
    return %arg0, %c0_i32 : i32, i32
  }
  func.func @transform_2(%arg0: i32) -> (i32, i32) {
    %c0_i32 = arith.constant 0 : i32
    %c0_i32_0 = arith.constant 0 : i32
    return %arg0, %c0_i32 : i32, i32
  }
}

</mosaic_0001>

<bundles_post_ra>
// kernel: tpu_custom_call.1
= control target key start
LH: loop header
LB: loop body
LE: loop exit
PB: predicated region body
PF: predicated region fallthrough
CT: control target
= control target key end

     0   :  { %v94_v2 = vmov 0   ;;  %s149_s0 = inlined_call_operand.vmem [shape: f32[32,128], index: 0, kind: input, shape index: {}]   ;;  %s150_s1 = inlined_call_operand.vmem [shape: f32[32,1], index: 1, kind: input, shape index: {}]   ;;  %s151_s2 = inlined_call_operand.hbm [shape: f32[32,128], index: 2, kind: output, shape index: {}]  }
   0x1   :  { %v18_v0 = vld [vmem:[%s150_s1 + $0x10] sm:$0xff]  ;;  %v16_v1 = vld [vmem:[%s150_s1] sm:$0xff]  ;;  %69 = vset.pattern.permute.xlu1 %v94_v2  ;;  %68 = vset.pattern.permute.xlu0 %v94_v2 }
   0x2   :  { %32 = vperm.xlu1 %69, %v18_v0   ;;  %22 = vperm.xlu0 %68, %v16_v1  }
   0x3   :  { %7 = vsyncpa [#allocation3], 0  ;;  %v19_v3 = vld [vmem:[%s150_s1 + $0x18] sm:$0xff]  ;;  %v17_v4 = vld [vmem:[%s150_s1 + $0x8] sm:$0xff]  ;;  %s95_s21 = smov [#allocation2]  }
   0x4   :  { %v14_v5 = vld [vmem:[%s149_s0 + $0x10] sm:$0xff]  ;;  %v12_v6 = vld [vmem:[%s149_s0] sm:$0xff]  ;;  %s53_s22 = sshll.u32 %s95_s21, 4  ;;  %v15_v11 = vld [vmem:[%s149_s0 + $0x18] sm:$0xff]  ;;  %s54_s22 = int_to_ptr.vmem [resolvable:$true] %s53_s22 }
   0x5   :  { %v13_v12 = vld [vmem:[%s149_s0 + $0x8] sm:$0xff]  ;;  %s70_s26 = scalar_lea.vmem %s54_s22, 512  ;;  %p75_p1 = scmp.lt.s32.totalorder %s54_s22, %s54_s22 }
   0x6   :  { %37 = vperm.xlu1 %69, %v19_v3   ;;  %27 = vperm.xlu0 %68, %v17_v4   ;;  %p71_p0 = scmp.ne.s32.totalorder %s54_s22, %s70_s26  ;;  %p76_p2 = scmp.lt.s32.totalorder %s70_s26, %s70_s26 }
   0x8   :  { %p77_p3 = por %p76_p2, %p75_p1 }
   0xa   :  { %p78_p4 = pnand %p77_p3, %p71_p0 }
  0x81   :  { %v33_v7 = vpop.permute.xlu1 %32  ;;  %v23_v8 = vpop.permute.xlu0 %22 }
  0x82   :  { %v42_v9 = vmul.f32 %v33_v7, %v14_v5  ;;  %v40_v10 = vmul.f32 %v23_v8, %v12_v6 }
  0x84   :  { %46 = vst [vmem:[#allocation2 + $0x10] sm:$0xff] %v42_v9  ;;  %44 = vst [vmem:[#allocation2] sm:$0xff] %v40_v10 }
  0x85   :  { %v38_v13 = vpop.permute.xlu1 %37  ;;  %v28_v14 = vpop.permute.xlu0 %27 }
  0x86   :  { %v43_v15 = vmul.f32 %v38_v13, %v15_v11  ;;  %v41_v16 = vmul.f32 %v28_v14, %v13_v12 }
  0x88   :  { %47 = vst [vmem:[#allocation2 + $0x18] sm:$0xff] %v43_v15  ;;  %45 = vst [vmem:[#allocation2 + $0x8] sm:$0xff] %v41_v16 }
  0x89   :  { %81 = shalt.err (!%p78_p4)
}
  0x8a   :  { %s82_s0 = scalar_lea.hbm %s151_s2, 512 }
  0x8b   :  { %p83_p5 = scmp.ne.s32.totalorder %s151_s2, %s82_s0  ;;  %p86_p6 = scmp.lt.u32.totalorder %s82_s0, %s151_s2 }
  0x8d   :  { %p88_p7 = pnand %p86_p6, %p83_p5 }
  0x8f   :  { %91 = shalt.err (!%p88_p7)
}
  0x90   :  { %s96_s5 = smov 128   ;;  %s97_s6 = smov 8  }
  0x91   :  { %59 = dma.vmem_to_hbm [thread:$0]  %s54_s22, 512, %s151_s2, [#allocation3], %s96_s5, %s96_s5, %s97_s6  }
  0x92   :  { %92 = dma.done.wait [#allocation3], 512  }
  0x93   :  { %93 = vsyncadd [#allocation3], 4294966784 }
  0x94   :  { %63 = vsyncpa [#allocation3], 1 }

</bundles_post_ra>
